<compile_context>
chip_gen: v6e
topology: v6e:2x2x1
jax: 0.10.0
libtpu: 0.0.40
codegen_flags: <defaults>
</compile_context>

<pallas_src>
import functools

import jax
import jax.numpy as jnp
from jax import lax
from jax.experimental import pallas as pl
from jax.experimental.pallas import tpu as pltpu

LN_EPS = 1e-12


def _round_up(x, m):
    return ((x + m - 1) // m) * m


def _layer_norm_rows(x, gamma, beta):
    """One-pass LayerNorm over the last axis. x: (R, H) f32; gamma/beta: (1, H) f32."""
    inv_h = 1.0 / float(x.shape[-1])
    s1 = jnp.sum(x, axis=-1, keepdims=True)
    s2 = jnp.sum(x * x, axis=-1, keepdims=True)
    mean = s1 * inv_h
    var = jnp.maximum(s2 * inv_h - mean * mean, 0.0)      # guard tiny negatives
    return (x - mean) * lax.rsqrt(var + LN_EPS) * gamma + beta


# ---------------------------------------------------------------------------
# Path 1: token table resident in VMEM (small vocab).  No DMA descriptors.
# ---------------------------------------------------------------------------
def _embed_ln_vmem_kernel(ids_ref,     # SMEM scalar prefetch: (S_pad*B,) int32
                          tok_ref,     # VMEM: (V_pad, H) token table (resident)
                          bias_ref,    # VMEM: (TM, H) f32 position(+segment) rows
                          gamma_ref,   # VMEM: (1, H) f32
                          beta_ref,    # VMEM: (1, H) f32
                          out_ref,     # VMEM: (TM, H) output tile
                          tok_buf):    # VMEM scratch: (TM, H) gathered token rows
    tm, _ = out_ref.shape
    base = pl.program_id(0) * tm

    @pl.loop(0, tm)
    def _gather(r):
        tid = ids_ref[base + r]
        tok_buf[pl.ds(r, 1), :] = tok_ref[pl.ds(tid, 1), :]

    x = tok_buf[...].astype(jnp.float32) + bias_ref[...]
    y = _layer_norm_rows(x, gamma_ref[...], beta_ref[...])
    # TODO(synk): nn.Dropout() in training mode would apply a p=0.5 mask; the
    # module is evaluated in inference mode, so dropout is the identity here.
    out_ref[...] = y.astype(out_ref.dtype)


# ---------------------------------------------------------------------------
# Path 2: token table in HBM (large vocab).  Chunked per-row DMA gather with a
# single aggregated wait per chunk and DMA/compute overlap across chunks.
# ---------------------------------------------------------------------------
def _embed_ln_hbm_kernel(ids_ref,      # SMEM scalar prefetch: (S_pad*B,) int32
                         tok_hbm,      # HBM (pl.ANY): (V, H) token table
                         bias_ref,     # VMEM: (TM, H) f32
                         gamma_ref,    # VMEM: (1, H) f32
                         beta_ref,     # VMEM: (1, H) f32
                         out_ref,      # VMEM: (TM, H)
                         tok_buf,      # VMEM scratch: (TM, H) gathered rows
                         sems,         # DMA semaphores, shape (2,)
                         *, n_chunks):
    tm, _ = out_ref.shape
    ch = tm // n_chunks                             # static, multiple of 8
    base = pl.program_id(0) * tm

    def issue(c, slot):
        @pl.loop(0, ch)
        def _issue(r):
            row = c * ch + r
            tid = ids_ref[base + row]
            pltpu.make_async_copy(
                tok_hbm.at[pl.ds(tid, 1)],          # (1, H) row in HBM
                tok_buf.at[pl.ds(row, 1)],          # (1, H) slot in VMEM
                sems.at[slot],
            ).start()

    def wait(c, slot):
        # Single aggregated wait for the whole chunk: DMA semaphores count
        # bytes and every row copy of this chunk was issued on `slot`, so one
        # descriptor sized to the chunk replaces `ch` per-row waits.  The src
        # of a wait-only descriptor is irrelevant; the dst fixes the byte
        # count and orders later reads of tok_buf after the wait.
        chunk = tok_buf.at[pl.ds(c * ch, ch)]
        pltpu.make_async_copy(chunk, chunk, sems.at[slot]).wait()

    gamma = gamma_ref[...]
    beta = beta_ref[...]

    issue(0, 0)
    for c in range(n_chunks):                       # static unroll
        if c + 1 < n_chunks:                        # prefetch next chunk's rows
            issue(c + 1, (c + 1) % 2)
        wait(c, c % 2)
        lo = c * ch                                 # static chunk offset
        x = (tok_buf[pl.ds(lo, ch), :].astype(jnp.float32)
             + bias_ref[pl.ds(lo, ch), :])
        y = _layer_norm_rows(x, gamma, beta)
        out_ref[pl.ds(lo, ch), :] = y.astype(out_ref.dtype)


# ---------------------------------------------------------------------------
# Wrapper
# ---------------------------------------------------------------------------
def bert_embeddings(seq, token_table, pos_table, seg_table, gamma, beta,
                    seg=None, *, tile_seq=None, gather_chunks=None,
                    table_vmem_max_bytes=4 * 2**20, out_dtype=jnp.float32):
    """seq: (S, B) int token ids (sequence-first, like the torch module).
    Returns LayerNorm(token[seq] + position[arange(S)] + segment[seg or 0]),
    shape (S, B, H).  Dropout is the identity (inference)."""
    S, B = seq.shape
    V, H = token_table.shape
    tok_dtype = token_table.dtype
    tok_bytes = jnp.dtype(tok_dtype).itemsize

    # ---- hardware-aware budgets ---------------------------------------------
    try:
        phys_vmem = int(pltpu.get_tpu_info().vmem_capacity_bytes)
    except Exception:
        phys_vmem = 64 * 2**20                     # smallest across v5e/v6e/v7x
    budget = min(int(phys_vmem * 0.40), 48 * 2**20)

    V_pad = _round_up(V, 8)
    table_bytes = V_pad * H * tok_bytes
    use_vmem_table = table_bytes <= min(table_vmem_max_bytes, budget // 4)
    tile_budget = budget - (2 * table_bytes if use_vmem_table else 0)

    # Bytes resident per gathered row per step: out block (f32, double-buffered)
    # + bias block (f32, double-buffered) + gather scratch (table dtype).
    per_row = H * (2 * 4 + 2 * 4 + tok_bytes)
    max_rows = max(8 * B, tile_budget // per_row)

    # ---- tile size: TS sequence positions x full batch per grid step ---------
    if tile_seq is None:
        ts = min(int(max_rows), 4096) // B
        ts = max(8, (ts // 8) * 8)
        TS = min(ts, _round_up(S, 8))
    else:
        TS = int(tile_seq)
        assert TS > 0 and TS % 8 == 0, "tile_seq must be a positive multiple of 8"
    S_pad = _round_up(S, TS)
    n_tiles = S_pad // TS
    TM = TS * B                                    # rows (tokens) per grid step

    # ---- chunking for the HBM gather path (bounds in-flight DMAs, enables
    #      issue->wait->compute overlap) ---------------------------------------
    if gather_chunks is None:
        gather_chunks = 1
        for c in (8, 4, 2):
            if TM % (8 * c) == 0 and TM // c >= 128:
                gather_chunks = c
                break
    else:
        gather_chunks = int(gather_chunks)
        assert gather_chunks >= 1 and TM % (8 * gather_chunks) == 0, \
            "gather_chunks must split TM into multiples of 8 rows"

    # ---- token ids: clamp (guards OOB gathers), pad, flatten (seq-major) -----
    ids = jnp.clip(seq.astype(jnp.int32), 0, V - 1)
    if S_pad != S:
        ids = jnp.pad(ids, ((0, S_pad - S), (0, 0)))   # pad rows use id 0
    ids_flat = ids.reshape(S_pad * B)

    # ---- position (+ segment) bias, expanded to the flat row layout ----------
    pos = pos_table[:S].astype(jnp.float32)            # (S, H)
    if seg is None:
        bias = pos + seg_table[0].astype(jnp.float32)[None, :]
    else:
        seg = jnp.asarray(seg)
        if seg.ndim == 2 and seg.shape[1] == 1:
            seg = seg[:, 0]
        if seg.ndim != 1 or seg.shape[0] != S:
            # TODO(synk): only sequence-broadcast segment ids ((S,) or (S, 1)),
            # matching the module's default, are supported; per-(S, B) segment
            # ids are not handled by this kernel.
            raise NotImplementedError("seg must be None, (S,) or (S, 1)")
        seg_ids = jnp.clip(seg.astype(jnp.int32), 0, seg_table.shape[0] - 1)
        bias = pos + seg_table[seg_ids].astype(jnp.float32)
    if S_pad != S:
        bias = jnp.pad(bias, ((0, S_pad - S), (0, 0)))
    bias_flat = jnp.broadcast_to(bias[:, None, :], (S_pad, B, H)).reshape(S_pad * B, H)

    gamma2 = gamma.reshape(1, H).astype(jnp.float32)
    beta2 = beta.reshape(1, H).astype(jnp.float32)

    # ---- table operand + specs ------------------------------------------------
    if use_vmem_table:
        table_arg = token_table if V_pad == V else jnp.pad(
            token_table, ((0, V_pad - V), (0, 0)))
        tok_spec = pl.BlockSpec((V_pad, H), lambda k, _ids: (0, 0))  # resident in VMEM
        kernel = _embed_ln_vmem_kernel
        scratch_shapes = [pltpu.VMEM((TM, H), tok_dtype)]
    else:
        table_arg = token_table
        tok_spec = pl.BlockSpec(memory_space=pl.ANY)                 # stays in HBM
        kernel = functools.partial(_embed_ln_hbm_kernel, n_chunks=gather_chunks)
        scratch_shapes = [pltpu.VMEM((TM, H), tok_dtype),
                          pltpu.SemaphoreType.DMA((2,))]

    grid_spec = pltpu.PrefetchScalarGridSpec(
        num_scalar_prefetch=1,                                       # ids -> SMEM
        grid=(n_tiles,),
        in_specs=[
            tok_spec,
            pl.BlockSpec((TM, H), lambda k, _ids: (k, 0)),           # bias rows
            pl.BlockSpec((1, H), lambda k, _ids: (0, 0)),            # gamma
            pl.BlockSpec((1, H), lambda k, _ids: (0, 0)),            # beta
        ],
        out_specs=pl.BlockSpec((TM, H), lambda k, _ids: (k, 0)),
        scratch_shapes=scratch_shapes,
    )

    step_bytes = per_row * TM + (2 * table_bytes if use_vmem_table else 0)
    vmem_limit = int(max(32 * 2**20,
                         min(int(0.8 * phys_vmem), 2 * step_bytes + 8 * 2**20)))

    out_flat = pl.pallas_call(
        kernel,
        out_shape=jax.ShapeDtypeStruct((S_pad * B, H), out_dtype),
        grid_spec=grid_spec,
        compiler_params=pltpu.CompilerParams(
            dimension_semantics=("parallel",),      # steps are independent
            vmem_limit_bytes=vmem_limit),
    )(ids_flat, table_arg, bias_flat, gamma2, beta2)

    out = out_flat.reshape(S_pad, B, H)             # free contiguous view
    return out[:S] if S_pad != S else out


if __name__ == "__main__":
    # Small, deterministic synthetic configuration (mirrors __init__ shapes).
    VOCAB = 100        # vocab_size
    HIDDEN = 128       # hidden_size
    MAX_LEN = 32       # max_length

    key = jax.random.PRNGKey(0)
    k_tok, k_pos, k_seg, k_g, k_b, k_ids1, k_ids2 = jax.random.split(key, 7)

    token_table = jax.random.normal(k_tok, (VOCAB, HIDDEN), dtype=jnp.float32)
    token_table = token_table.at[0].set(0.0)        # padding_idx=0 -> row 0 zeroed
    pos_table = jax.random.normal(k_pos, (MAX_LEN, HIDDEN), dtype=jnp.float32)
    seg_table = jax.random.normal(k_seg, (2, HIDDEN), dtype=jnp.float32)
    gamma = jax.random.normal(k_g, (HIDDEN,), dtype=jnp.float32)
    beta = jax.random.normal(k_b, (HIDDEN,), dtype=jnp.float32)

    def reference(seq):
        S_, B_ = seq.shape
        emb = (token_table[seq]
               + pos_table[jnp.arange(S_)][:, None, :]
               + seg_table[jnp.zeros((S_, B_), jnp.int32)])
        mean = emb.mean(axis=-1, keepdims=True)
        var = ((emb - mean) ** 2).mean(axis=-1, keepdims=True)
        return (emb - mean) / jnp.sqrt(var + LN_EPS) * gamma + beta

    # Case 1: single tile, VMEM-resident-table path (S=8, B=2).
    seq1 = jax.random.randint(k_ids1, (8, 2), 0, VOCAB, dtype=jnp.int32)
    out1 = jax.block_until_ready(
        bert_embeddings(seq1, token_table, pos_table, seg_table, gamma, beta))
    assert out1.shape == (8, 2, HIDDEN)
    assert jnp.allclose(out1, reference(seq1), atol=1e-4, rtol=1e-5)

    # Case 2: multiple tiles + sequence padding, VMEM path (S=20 -> S_pad=24).
    seq2 = jax.random.randint(k_ids2, (20, 2), 0, VOCAB, dtype=jnp.int32)
    out2 = jax.block_until_ready(
        bert_embeddings(seq2, token_table, pos_table, seg_table, gamma, beta,
                        tile_seq=8))
    assert out2.shape == (20, 2, HIDDEN)
    assert jnp.allclose(out2, reference(seq2), atol=1e-4, rtol=1e-5)

    # Case 3: force the HBM-table path (chunked DMA gather + aggregated waits).
    out3 = jax.block_until_ready(
        bert_embeddings(seq2, token_table, pos_table, seg_table, gamma, beta,
                        tile_seq=16, gather_chunks=2, table_vmem_max_bytes=0))
    assert out3.shape == (20, 2, HIDDEN)
    assert jnp.allclose(out3, reference(seq2), atol=1e-4, rtol=1e-5)

    print("KERNEL_OK")
</pallas_src>

<mosaic_0001>
module attributes {stable_mosaic.version = 11 : i64} {
  func.func @_embed_ln_vmem_kernel(%arg0: i32, %arg1: memref<16xi32, #tpu.memory_space<smem>>, %arg2: memref<104x128xf32, #tpu.memory_space<vmem>>, %arg3: memref<16x128xf32, #tpu.memory_space<vmem>>, %arg4: memref<1x128xf32, #tpu.memory_space<vmem>>, %arg5: memref<1x128xf32, #tpu.memory_space<vmem>>, %arg6: memref<16x128xf32, #tpu.memory_space<vmem>>, %arg7: memref<16x128xf32, #tpu.memory_space<vmem>>) attributes {dimension_semantics = [#tpu.dimension_semantics<parallel>], iteration_bounds = array<i64: 1>, scalar_prefetch = 1 : i64, scratch_operands = 1 : i64, tpu.core_type = #tpu.core_type<tc>, window_params = [{pipeline_mode = #tpu.pipeline_mode<synchronous>, transform_indices = @transform_0, window_bounds = array<i64: 104, 128>}, {transform_indices = @transform_1, window_bounds = array<i64: 16, 128>}, {pipeline_mode = #tpu.pipeline_mode<synchronous>, transform_indices = @transform_2, window_bounds = array<i64: 1, 128>}, {pipeline_mode = #tpu.pipeline_mode<synchronous>, transform_indices = @transform_3, window_bounds = array<i64: 1, 128>}, {transform_indices = @transform_4, window_bounds = array<i64: 16, 128>}]} {
    %c16_i32 = arith.constant 16 : i32
    %0 = arith.muli %arg0, %c16_i32 : i32
    %c0_i32 = arith.constant 0 : i32
    %c16_i32_0 = arith.constant 16 : i32
    %1 = arith.addi %c0_i32, %c16_i32_0 : i32
    %c1_i32 = arith.constant 1 : i32
    scf.for %arg8 = %c0_i32 to %1 step %c1_i32  : i32 {
      %c1_i32_16 = arith.constant 1 : i32
      %32 = arith.muli %arg8, %c1_i32_16 : i32
      %c0_i32_17 = arith.constant 0 : i32
      %33 = arith.addi %c0_i32_17, %32 : i32
      %34 = arith.addi %0, %33 : i32
      %35 = arith.index_cast %34 : i32 to index
      %36 = memref.load %arg1[%35] : memref<16xi32, #tpu.memory_space<smem>>
      %37 = arith.index_cast %36 : i32 to index
      %c0_18 = arith.constant 0 : index
      %38 = vector.load %arg2[%37, %c0_18] : memref<104x128xf32, #tpu.memory_space<vmem>>, vector<1x128xf32>
      %39 = arith.index_cast %33 : i32 to index
      %c0_19 = arith.constant 0 : index
      %40 = vector.load %arg7[%39, %c0_19] : memref<16x128xf32, #tpu.memory_space<vmem>>, vector<1x128xf32>
      tpu.vector_store %arg7[%39, %c0_19], %38 {strides = array<i32>} : memref<16x128xf32, #tpu.memory_space<vmem>>, vector<1x128xf32>,
    }
    %c16_i32_1 = arith.constant 16 : i32
    %c0 = arith.constant 0 : index
    %c0_2 = arith.constant 0 : index
    %2 = vector.load %arg7[%c0, %c0_2] : memref<16x128xf32, #tpu.memory_space<vmem>>, vector<16x128xf32>
    %c0_3 = arith.constant 0 : index
    %c0_4 = arith.constant 0 : index
    %3 = vector.load %arg3[%c0_3, %c0_4] : memref<16x128xf32, #tpu.memory_space<vmem>>, vector<16x128xf32>
    %4 = arith.addf %2, %3 : vector<16x128xf32>
    %c0_5 = arith.constant 0 : index
    %c0_6 = arith.constant 0 : index
    %5 = vector.load %arg4[%c0_5, %c0_6] : memref<1x128xf32, #tpu.memory_space<vmem>>, vector<1x128xf32>
    %c0_7 = arith.constant 0 : index
    %c0_8 = arith.constant 0 : index
    %6 = vector.load %arg5[%c0_7, %c0_8] : memref<1x128xf32, #tpu.memory_space<vmem>>, vector<1x128xf32>
    %cst = arith.constant dense<0.000000e+00> : vector<16xf32>
    %7 = vector.multi_reduction <add>, %4, %cst [1] : vector<16x128xf32> to vector<16xf32>
    %8 = vector.shape_cast %7 : vector<16xf32> to vector<16x1xf32>
    %9 = arith.mulf %4, %4 : vector<16x128xf32>
    %cst_9 = arith.constant dense<0.000000e+00> : vector<16xf32>
    %10 = vector.multi_reduction <add>, %9, %cst_9 [1] : vector<16x128xf32> to vector<16xf32>
    %11 = vector.shape_cast %10 : vector<16xf32> to vector<16x1xf32>
    %cst_10 = arith.constant 7.812500e-03 : f32
    %12 = vector.broadcast %cst_10 : f32 to vector<16x1xf32>
    %13 = arith.mulf %8, %12 : vector<16x1xf32>
    %cst_11 = arith.constant 7.812500e-03 : f32
    %14 = vector.broadcast %cst_11 : f32 to vector<16x1xf32>
    %15 = arith.mulf %11, %14 : vector<16x1xf32>
    %16 = arith.mulf %13, %13 : vector<16x1xf32>
    %17 = arith.subf %15, %16 : vector<16x1xf32>
    %cst_12 = arith.constant 0.000000e+00 : f32
    %18 = vector.broadcast %cst_12 : f32 to vector<16x1xf32>
    %19 = arith.maximumf %17, %18 : vector<16x1xf32>
    %20 = vector.broadcast %13 : vector<16x1xf32> to vector<16x128xf32>
    %21 = arith.subf %4, %20 : vector<16x128xf32>
    %cst_13 = arith.constant 9.99999996E-13 : f32
    %22 = vector.broadcast %cst_13 : f32 to vector<16x1xf32>
    %23 = arith.addf %19, %22 : vector<16x1xf32>
    %24 = math.rsqrt %23 : vector<16x1xf32>
    %25 = vector.broadcast %24 : vector<16x1xf32> to vector<16x128xf32>
    %26 = arith.mulf %21, %25 : vector<16x128xf32>
    %27 = vector.broadcast %5 : vector<1x128xf32> to vector<16x128xf32>
    %28 = arith.mulf %26, %27 : vector<16x128xf32>
    %29 = vector.broadcast %6 : vector<1x128xf32> to vector<16x128xf32>
    %30 = arith.addf %28, %29 : vector<16x128xf32>
    %c0_14 = arith.constant 0 : index
    %c0_15 = arith.constant 0 : index
    %31 = vector.load %arg6[%c0_14, %c0_15] : memref<16x128xf32, #tpu.memory_space<vmem>>, vector<16x128xf32>
    tpu.vector_store %arg6[%c0_14, %c0_15], %30 {strides = array<i32>} : memref<16x128xf32, #tpu.memory_space<vmem>>, vector<16x128xf32>,
    return
  }
  func.func @transform_0(%arg0: i32, %arg1: memref<16xi32, #tpu.memory_space<smem>>) -> (i32, i32) {
    %c0_i32 = arith.constant 0 : i32
    %c0_i32_0 = arith.constant 0 : i32
    %c0_i32_1 = arith.constant 0 : i32
    return %c0_i32, %c0_i32_0 : i32, i32
  }
  func.func @transform_1(%arg0: i32, %arg1: memref<16xi32, #tpu.memory_space<smem>>) -> (i32, i32) {
    %c0_i32 = arith.constant 0 : i32
    %c0_i32_0 = arith.constant 0 : i32
    return %arg0, %c0_i32 : i32, i32
  }
  func.func @transform_2(%arg0: i32, %arg1: memref<16xi32, #tpu.memory_space<smem>>) -> (i32, i32) {
    %c0_i32 = arith.constant 0 : i32
    %c0_i32_0 = arith.constant 0 : i32
    %c0_i32_1 = arith.constant 0 : i32
    return %c0_i32, %c0_i32_0 : i32, i32
  }
  func.func @transform_3(%arg0: i32, %arg1: memref<16xi32, #tpu.memory_space<smem>>) -> (i32, i32) {
    %c0_i32 = arith.constant 0 : i32
    %c0_i32_0 = arith.constant 0 : i32
    %c0_i32_1 = arith.constant 0 : i32
    return %c0_i32, %c0_i32_0 : i32, i32
  }
  func.func @transform_4(%arg0: i32, %arg1: memref<16xi32, #tpu.memory_space<smem>>) -> (i32, i32) {
    %c0_i32 = arith.constant 0 : i32
    %c0_i32_0 = arith.constant 0 : i32
    return %arg0, %c0_i32 : i32, i32
  }
}

</mosaic_0001>

<bundles_post_ra>
// kernel: tpu_custom_call.1
= control target key start
LH: loop header
LB: loop body
LE: loop exit
PB: predicated region body
PF: predicated region fallthrough
CT: control target
= control target key end

     0   :  { %s247_s18 = smov [#allocation4]   ;;  %s310_s0 = inlined_call_operand.hbm [shape: s32[16], index: 0, kind: input, shape index: {}]   ;;  %s311_s1 = inlined_call_operand.hbm [shape: f32[104,128], index: 1, kind: input, shape index: {}]   ;;  %s312_s2 = inlined_call_operand.hbm [shape: f32[16,128], index: 2, kind: input, shape index: {}]   ;;  %s313_s3 = inlined_call_operand.vmem [shape: f32[1,128], index: 3, kind: input, shape index: {}]   ;;  %s314_s4 = inlined_call_operand.vmem [shape: f32[1,128], index: 4, kind: input, shape index: {}]   ;;  %s315_s5 = inlined_call_operand.hbm [shape: f32[16,128], index: 5, kind: output, shape index: {}]  }
   0x1   :  { %11 = dma.hbm_to_smem %s310_s0, 16, %s247_s18, [#allocation3] }
   0x2   :  { %235 = dma.done.wait [#allocation3], 16 }
   0x3   :  { %236 = vsyncadd [#allocation3], 4294967280 }
   0x4   :  { %13 = sfence }
   0x5   :  { %14 = vsyncpa [#allocation6], 0 }
   0x6   :  { %15 = vsyncpa [#allocation9], 0 }
   0x7   :  { %16 = vsyncpa [#allocation7], 0  ;;  %s248_s21 = smov [#allocation5]  }
   0x8   :  { %s22_s22 = sshll.u32 %s248_s21, 4  ;;  %s23_s22 = int_to_ptr.vmem [resolvable:$true] %s22_s22 }
   0x9   :  { %s179_s23 = scalar_lea.vmem %s23_s22, 1664  ;;  %p184_p1 = scmp.lt.s32.totalorder %s23_s22, %s23_s22 }
   0xa   :  { %p180_p0 = scmp.ne.s32.totalorder %s23_s22, %s179_s23  ;;  %p185_p2 = scmp.lt.s32.totalorder %s179_s23, %s179_s23 }
   0xc   :  { %p186_p3 = por %p185_p2, %p184_p1 }
   0xe   :  { %p187_p4 = pnand %p186_p3, %p180_p0 }
  0x10   :  { %190 = shalt.err (!%p187_p4)
}
  0x11   :  { %s249_s24 = smov 128   ;;  %s250_s25 = smov 8  }
  0x12   :  { %28 = dma.hbm_to_vmem [thread:$0]  %s311_s1, 1664, %s23_s22, [#allocation6], %s249_s24, %s249_s24, %s250_s25  }
  0x13   :  { %s251_s27 = smov [#allocation8]  }
  0x14   :  { %s34_s28 = sshll.u32 %s251_s27, 4  ;;  %s35_s28 = int_to_ptr.vmem [resolvable:$true] %s34_s28 }
  0x15   :  { %s199_s29 = scalar_lea.vmem %s35_s28, 256  ;;  %p204_p6 = scmp.lt.s32.totalorder %s35_s28, %s35_s28 }
  0x16   :  { %p200_p5 = scmp.ne.s32.totalorder %s35_s28, %s199_s29  ;;  %p205_p7 = scmp.lt.s32.totalorder %s199_s29, %s199_s29 }
  0x18   :  { %p206_p8 = por %p205_p7, %p204_p6 }
  0x1a   :  { %p207_p9 = pnand %p206_p8, %p200_p5 }
  0x1c   :  { %210 = shalt.err (!%p207_p9)
}
  0x1d   :  { %40 = dma.hbm_to_vmem [thread:$0]  %s312_s2, 256, %s35_s28, [#allocation9], %s249_s24, %s249_s24, %s250_s25  }
  0x1e   :  { %237 = dma.done.wait [#allocation6], 1664  }
  0x1f   :  { %238 = vsyncadd [#allocation6], 4294965632 }
  0x20   :  { %239 = dma.done.wait [#allocation9], 256  }
  0x21   :  { %240 = vsyncadd [#allocation9], 4294967040  ;;  %s243_s1 = smov 0  }
  0x22 LB: > { %s59_s7 = sld [smem:[#allocation4 + %s245_s1]]  ;;  %s62_s9 = scalar_lea.vmem [#allocation2], %s245_s1  ;;  %s245_s1 = sphi %s243_s1, %s57_s1  }
  0x23   : > { %s57_s1 = sadd.s32 1, %s245_s1  }
  0x24   : > { %p54_p10 = scmp.ge.s32.totalorder %s57_s1, 16  }
  0x25   :  { %v66_v2 = vld [vmem:[#allocation8] sm:$0xff] (%p54_p10)  ;;  %v67_v5 = vld [vmem:[#allocation8 + $0x8] sm:$0xff] (%p54_p10)  ;;  %s252_s13 = smov (%p54_p10), [#allocation10]  }
  0x26   :  { %56 = sbr.rel (!%p54_p10) target bundleno = 34 (0x22), region = 53  ;;  %v143_v27 = vld [vmem:[%s313_s3] ss:$0 sm:$0xff] (%p54_p10)  ;;  %s123_s14 = sshll.u32 (%p54_p10), %s252_s13, 4  ;;  %s124_s14 = int_to_ptr.vmem [resolvable:$true] %s123_s14 }
  0x27   :  { %v144_v29 = vld [vmem:[%s314_s4] ss:$0 sm:$0xff] (%p54_p10)  ;;  %s211_s15 = scalar_lea.vmem (%p54_p10), %s124_s14, 256  ;;  %p216_p12 = scmp.lt.s32.totalorder (%p54_p10), %s124_s14, %s124_s14 }
  0x28   : > { %s60_s8 = scalar_lea.vmem [#allocation5], %s59_s7  ;;  %p212_p11 = scmp.ne.s32.totalorder (%p54_p10), %s124_s14, %s211_s15 }
  0x29   : > { %v61_v0 = vld [vmem:[%s60_s8] sm:$0x1]  ;;  %p217_p13 = scmp.lt.s32.totalorder (%p54_p10), %s211_s15, %s211_s15 }
  0x2a   : > { %63 = vst [vmem:[%s62_s9] sm:$0x1] %v61_v0 }
  0x2b   :  { %p218_p0 = por %p217_p13, %p216_p12 }
  0x2d   :  { %p219_p1 = pnand %p218_p0, %p212_p11 }
  0x31   :  { %v64_v1 = vld [vmem:[#allocation2] sm:$0xff]  ;;  %v65_v3 = vld [vmem:[#allocation2 + $0x8] sm:$0xff] }
  0x32   :  { %v68_v4 = vadd.f32 %v66_v2, %v64_v1  ;;  %v69_v6 = vadd.f32 %v67_v5, %v65_v3 }
  0x34   :  { %72 = vadd.xlane.f32.xlu0 %v68_v4  ;;  %v76_v7 = vmul.f32 %v68_v4, %v68_v4  ;;  %v77_v8 = vmul.f32 %v69_v6, %v69_v6 }
  0x36   :  { %78 = vadd.xlane.f32.xlu1 %v76_v7 }
  0x38   :  { %74 = vadd.xlane.f32.xlu0 %v69_v6 }
  0x3a   :  { %80 = vadd.xlane.f32.xlu1 %v77_v8 }
  0xbd   :  { %v73_v9 = vpop.xlane.xlu0 %72 }
  0xbe   :  { %v82_v10 = vmul.f32 0.0078125, %v73_v9 }
  0xbf   :  { %v79_v11 = vpop.xlane.xlu1 %78 }
  0xc0   :  { %v86_v12 = vmul.f32 %v82_v10, %v82_v10  ;;  %v84_v13 = vmul.f32 0.0078125, %v79_v11  ;;  %v92_v25 = vsub.f32 %v68_v4, %v82_v10 }
  0xc1   :  { %v75_v14 = vpop.xlane.xlu0 %74 }
  0xc2   :  { %v88_v15 = vsub.f32 %v84_v13, %v86_v12  ;;  %v83_v16 = vmul.f32 0.0078125, %v75_v14 }
  0xc3   :  { %v81_v17 = vpop.xlane.xlu1 %80 }
  0xc4   :  { %v90_v18 = vmax.f32 %v88_v15, 0.0  ;;  %v87_v19 = vmul.f32 %v83_v16, %v83_v16  ;;  %v85_v20 = vmul.f32 0.0078125, %v81_v17  ;;  %v93_v30 = vsub.f32 %v69_v6, %v83_v16 }
  0xc6   :  { %v94_v21 = vadd.f32 1e-12, %v90_v18  ;;  %v89_v22 = vsub.f32 %v85_v20, %v87_v19 }
  0xc8   :  { %159 = vrsqrt.f32 %v94_v21  ;;  %v91_v23 = vmax.f32 %v89_v22, 0.0 }
  0xca   :  { %v95_v24 = vadd.f32 1e-12, %v91_v23 }
  0xcc   :  { %161 = vrsqrt.f32 %v95_v24 }
  0xd5   :  { %v160_v26 = vpop.eup %159 }
  0xd6   :  { %v98_v28 = vmul.f32 %v160_v26, %v92_v25 }
  0xd8   :  { %v106_v31 = vmul.f32 %v143_v27, %v98_v28 }
  0xd9   :  { %v162_v32 = vpop.eup %161 }
  0xda   :  { %v99_v33 = vmul.f32 %v162_v32, %v93_v30  ;;  %v114_v34 = vadd.f32 %v144_v29, %v106_v31 }
  0xdc   :  { %v107_v35 = vmul.f32 %v143_v27, %v99_v33  ;;  %116 = vst [vmem:[#allocation10] sm:$0xff] %v114_v34 }
  0xde   :  { %v115_v36 = vadd.f32 %v144_v29, %v107_v35 }
  0xe0   :  { %117 = vst [vmem:[#allocation10 + $0x8] sm:$0xff] %v115_v36 }
  0xe1   :  { %222 = shalt.err (!%p219_p1)
}
  0xe2   :  { %129 = dma.vmem_to_hbm [thread:$0]  %s124_s14, 256, %s315_s5, [#allocation7], %s249_s24, %s249_s24, %s250_s25  }
  0xe3   :  { %241 = dma.done.wait [#allocation7], 256  }
  0xe4   :  { %242 = vsyncadd [#allocation7], 4294967040 }
  0xe5   :  { %133 = vsyncpa [#allocation6], 1 }
  0xe6   :  { %134 = vsyncpa [#allocation9], 1 }
  0xe7   :  { %135 = vsyncpa [#allocation7], 1 }

</bundles_post_ra>
